<compile_context>
chip_gen: v7x
topology: tpu7x:2x2x1
jax: 0.10.0
libtpu: 0.0.40
codegen_flags: <defaults>
</compile_context>

<pallas_src>
import functools

import jax
import jax.numpy as jnp
from jax.experimental import pallas as pl
from jax.experimental.pallas import tpu as pltpu


# ---------------------------------------------------------------------------
# Kernel 1: conv-as-GEMM (+ bias + ReLU), output tiled along lanes.
# ---------------------------------------------------------------------------
def _conv_gemm_relu_kernel(w_ref, p_ref, b_ref, o_ref):
    # w_ref: (D, K)   conv weight reshaped (col = c*9 + dy*3 + dx)
    # p_ref: (K, TM)  im2col patches for TM output pixels (pixels on lanes)
    # b_ref: (D, 1)
    # o_ref: (D, TM)
    acc = jnp.dot(w_ref[...], p_ref[...], preferred_element_type=jnp.float32)
    o_ref[...] = jnp.maximum(acc + b_ref[...], 0.0).astype(o_ref.dtype)


# ---------------------------------------------------------------------------
# Kernel 2: fused policy+value heads, K-tiled reduction with accumulator.
# ---------------------------------------------------------------------------
def _heads_kernel(f_ref, w_ref, b_ref, o_ref, acc_ref, *, value_col):
    # f_ref: (B, TK) features, w_ref: (TK, N_pad) = [Wp | Wv | 0],
    # b_ref: (1, N_pad), o_ref/acc_ref: (B, N_pad)
    k = pl.program_id(0)

    @pl.when(k == 0)
    def _init():
        acc_ref[...] = jnp.zeros_like(acc_ref)

    acc_ref[...] += jnp.dot(f_ref[...], w_ref[...],
                            preferred_element_type=jnp.float32)

    @pl.when(k == pl.num_programs(0) - 1)
    def _finalize():
        z = acc_ref[...] + b_ref[...]
        col = jax.lax.broadcasted_iota(jnp.int32, z.shape, 1)
        # tanh only on the value column; policy columns pass through.
        o_ref[...] = jnp.where(col == value_col, jnp.tanh(z), z).astype(o_ref.dtype)


def _pick_tile_k(f_dim, n_cols, *, itemsize=4, max_block_bytes=4 << 20,
                 overhead_rows=512, cap=4096):
    """Pick a lane-aligned K tile minimizing (#steps * overhead + padded rows)."""
    best_t, best_cost = 128, None
    t = 128
    while t <= cap and t * n_cols * itemsize <= max_block_bytes:
        steps = pl.cdiv(f_dim, t)
        cost = steps * (t + overhead_rows)
        if best_cost is None or cost < best_cost:
            best_cost, best_t = cost, t
        t += 128
    return best_t


# ---------------------------------------------------------------------------
# Wrapper: full CNN.forward.  Weights are passed in PyTorch layouts.
# ---------------------------------------------------------------------------
def cnn_forward(x, conv_w, conv_b, fcp_w, fcp_b, fcv_w, fcv_b,
                *, game_size, seq_len, in_channels=3, tm=128):
    assert tm % 128 == 0
    B = x.shape[0]
    H = W = game_size
    Cin = in_channels * seq_len
    D = conv_w.shape[0]
    Np = fcp_w.shape[0]
    HW = H * W
    K = Cin * 9
    M = B * HW

    x = x.reshape(B, Cin, H, W).astype(jnp.float32)  # torch x.view(...)

    # ---- im2col (XLA glue; one pass over x), transposed to (K, M) ----------
    xp = jnp.pad(x, ((0, 0), (0, 0), (1, 1), (1, 1)))
    taps = [xp[:, :, dy:dy + H, dx:dx + W] for dy in range(3) for dx in range(3)]
    cols = jnp.stack(taps, axis=2)                                 # [B, Cin, 9, H, W]
    patches_t = cols.transpose(1, 2, 0, 3, 4).reshape(K, M)        # col = b*HW + h*W + w

    M_pad = pl.cdiv(M, tm) * tm
    if M_pad != M:
        patches_t = jnp.pad(patches_t, ((0, 0), (0, M_pad - M)))

    wc = conv_w.reshape(D, K).astype(jnp.float32)                  # [D, K]
    bc = conv_b.reshape(D, 1).astype(jnp.float32)

    conv_out = pl.pallas_call(
        _conv_gemm_relu_kernel,
        out_shape=jax.ShapeDtypeStruct((D, M_pad), jnp.float32),
        grid=(M_pad // tm,),
        in_specs=[
            pl.BlockSpec((D, K), lambda i: (0, 0)),   # grid-invariant weight
            pl.BlockSpec((K, tm), lambda i: (0, i)),
            pl.BlockSpec((D, 1), lambda i: (0, 0)),
        ],
        out_specs=pl.BlockSpec((D, tm), lambda i: (0, i)),
        compiler_params=pltpu.CompilerParams(
            dimension_semantics=("parallel",),
            vmem_limit_bytes=32 * 1024 * 1024,
        ),
        cost_estimate=pl.CostEstimate(
            flops=2 * D * K * M_pad,
            transcendentals=0,
            bytes_accessed=4 * (D * K + K * M_pad + D + D * M_pad)),
    )(wc, patches_t, bc)

    # ---- flatten features directly in torch NCHW order: f = d*HW + hw ------
    F = D * HW
    feat = (conv_out[:, :M].reshape(D, B, HW)
            .transpose(1, 0, 2).reshape(B, F))

    # ---- fused head weights: [Wp | Wv | zeros] -> (F, N_pad) ---------------
    N_pad = pl.cdiv(Np + 1, 128) * 128
    w_comb = jnp.zeros((F, N_pad), jnp.float32)
    w_comb = w_comb.at[:, :Np].set(fcp_w.T.astype(jnp.float32))
    w_comb = w_comb.at[:, Np:Np + 1].set(fcv_w.T.astype(jnp.float32))
    b_comb = jnp.zeros((1, N_pad), jnp.float32)
    b_comb = b_comb.at[0, :Np].set(fcp_b.astype(jnp.float32))
    b_comb = b_comb.at[0, Np].set(fcv_b.astype(jnp.float32)[0])

    tk = _pick_tile_k(F, N_pad)
    F_pad = pl.cdiv(F, tk) * tk
    if F_pad != F:
        feat = jnp.pad(feat, ((0, 0), (0, F_pad - F)))
        w_comb = jnp.pad(w_comb, ((0, F_pad - F), (0, 0)))

    heads_out = pl.pallas_call(
        functools.partial(_heads_kernel, value_col=Np),
        out_shape=jax.ShapeDtypeStruct((B, N_pad), jnp.float32),
        grid=(F_pad // tk,),
        in_specs=[
            pl.BlockSpec((B, tk), lambda k: (0, k)),
            pl.BlockSpec((tk, N_pad), lambda k: (k, 0)),
            pl.BlockSpec((1, N_pad), lambda k: (0, 0)),
        ],
        out_specs=pl.BlockSpec((B, N_pad), lambda k: (0, 0)),
        scratch_shapes=[pltpu.VMEM((B, N_pad), jnp.float32)],
        compiler_params=pltpu.CompilerParams(
            dimension_semantics=("arbitrary",),
            vmem_limit_bytes=32 * 1024 * 1024,
        ),
        cost_estimate=pl.CostEstimate(
            flops=2 * B * F_pad * N_pad,
            transcendentals=B * N_pad,
            bytes_accessed=4 * (B * F_pad + F_pad * N_pad + N_pad + B * N_pad)),
    )(feat, w_comb, b_comb)

    policy = heads_out[:, :Np]
    value = heads_out[:, Np:Np + 1]
    return policy, value


if __name__ == "__main__":
    # Small shapes consistent with the module (embed_dim shrunk 128 -> 32).
    B = 2
    game_size = 15
    num_history = 2
    seq_len = num_history + 1          # 3
    in_channels = 3
    Cin = in_channels * seq_len        # 9
    embed_dim = 32
    HW = game_size * game_size         # 225
    F = embed_dim * HW                 # 7200

    key = jax.random.PRNGKey(0)
    kx, k1, k2, k3, k4, k5, k6 = jax.random.split(key, 7)
    x = jax.random.normal(kx, (B, seq_len, in_channels, game_size, game_size), jnp.float32)
    conv_w = jax.random.normal(k1, (embed_dim, Cin, 3, 3), jnp.float32) * 0.05
    conv_b = jax.random.normal(k2, (embed_dim,), jnp.float32) * 0.05
    fcp_w = jax.random.normal(k3, (HW, F), jnp.float32) * 0.02
    fcp_b = jax.random.normal(k4, (HW,), jnp.float32) * 0.02
    fcv_w = jax.random.normal(k5, (1, F), jnp.float32) * 0.02
    fcv_b = jax.random.normal(k6, (1,), jnp.float32) * 0.02

    policy, value = cnn_forward(x, conv_w, conv_b, fcp_w, fcp_b, fcv_w, fcv_b,
                                game_size=game_size, seq_len=seq_len)
    policy, value = jax.block_until_ready((policy, value))

    # Pure-JAX reference replicating the PyTorch forward exactly (NCHW flatten).
    hp = jax.lax.Precision.HIGHEST
    x_nchw = x.reshape(B, Cin, game_size, game_size)
    conv = jax.lax.conv_general_dilated(
        x_nchw, conv_w, window_strides=(1, 1), padding="SAME",
        dimension_numbers=("NCHW", "OIHW", "NCHW"), precision=hp)
    h = jnp.maximum(conv + conv_b[None, :, None, None], 0.0)
    feat_ref = h.reshape(B, -1)                                    # torch x.view(B, -1)
    ref_policy = jnp.dot(feat_ref, fcp_w.T, precision=hp) + fcp_b
    ref_value = jnp.tanh(jnp.dot(feat_ref, fcv_w.T, precision=hp) + fcv_b)

    assert policy.shape == (B, HW) and value.shape == (B, 1)
    assert jnp.allclose(policy, ref_policy, atol=1e-3, rtol=1e-3), \
        float(jnp.max(jnp.abs(policy - ref_policy)))
    assert jnp.allclose(value, ref_value, atol=1e-3, rtol=1e-3), \
        float(jnp.max(jnp.abs(value - ref_value)))

    print("KERNEL_OK")
</pallas_src>

<mosaic_0001>
module attributes {stable_mosaic.version = 11 : i64} {
  func.func @_conv_gemm_relu_kernel(%arg0: i32, %arg1: memref<32x81xf32, #tpu.memory_space<vmem>>, %arg2: memref<81x128xf32, #tpu.memory_space<vmem>>, %arg3: memref<32x1xf32, #tpu.memory_space<vmem>>, %arg4: memref<32x128xf32, #tpu.memory_space<vmem>>) attributes {dimension_semantics = [#tpu.dimension_semantics<parallel>], iteration_bounds = array<i64: 4>, scalar_prefetch = 0 : i64, scratch_operands = 0 : i64, tpu.core_type = #tpu.core_type<tc>, window_params = [{pipeline_mode = #tpu.pipeline_mode<synchronous>, transform_indices = @transform_0, window_bounds = array<i64: 32, 81>}, {transform_indices = @transform_1, window_bounds = array<i64: 81, 128>}, {pipeline_mode = #tpu.pipeline_mode<synchronous>, transform_indices = @transform_2, window_bounds = array<i64: 32, 1>}, {transform_indices = @transform_3, window_bounds = array<i64: 32, 128>}]} {
    %c0 = arith.constant 0 : index
    %c0_0 = arith.constant 0 : index
    %0 = vector.load %arg1[%c0, %c0_0] : memref<32x81xf32, #tpu.memory_space<vmem>>, vector<32x81xf32>
    %c0_1 = arith.constant 0 : index
    %c0_2 = arith.constant 0 : index
    %1 = vector.load %arg2[%c0_1, %c0_2] : memref<81x128xf32, #tpu.memory_space<vmem>>, vector<81x128xf32>
    %cst = arith.constant dense<0.000000e+00> : vector<32x128xf32>
    %2 = tpu.matmul %0, %1, %cst {dimension_numbers = #tpu.dot_dimension_numbers<[1], [0], [0], [1], [0, 0, 1, 1], [], []>} : vector<32x81xf32>, vector<81x128xf32>, vector<32x128xf32> -> vector<32x128xf32>
    %c0_3 = arith.constant 0 : index
    %c0_4 = arith.constant 0 : index
    %3 = vector.load %arg3[%c0_3, %c0_4] : memref<32x1xf32, #tpu.memory_space<vmem>>, vector<32x1xf32>
    %4 = vector.broadcast %3 : vector<32x1xf32> to vector<32x128xf32>
    %5 = arith.addf %2, %4 : vector<32x128xf32>
    %cst_5 = arith.constant 0.000000e+00 : f32
    %6 = vector.broadcast %cst_5 : f32 to vector<32x128xf32>
    %7 = arith.maximumf %5, %6 : vector<32x128xf32>
    %c0_6 = arith.constant 0 : index
    %c0_7 = arith.constant 0 : index
    %8 = vector.load %arg4[%c0_6, %c0_7] : memref<32x128xf32, #tpu.memory_space<vmem>>, vector<32x128xf32>
    tpu.vector_store %arg4[%c0_6, %c0_7], %7 {strides = array<i32>} : memref<32x128xf32, #tpu.memory_space<vmem>>, vector<32x128xf32>,
    return
  }
  func.func @transform_0(%arg0: i32) -> (i32, i32) {
    %c0_i32 = arith.constant 0 : i32
    %c0_i32_0 = arith.constant 0 : i32
    %c0_i32_1 = arith.constant 0 : i32
    return %c0_i32, %c0_i32_0 : i32, i32
  }
  func.func @transform_1(%arg0: i32) -> (i32, i32) {
    %c0_i32 = arith.constant 0 : i32
    %c0_i32_0 = arith.constant 0 : i32
    return %c0_i32, %arg0 : i32, i32
  }
  func.func @transform_2(%arg0: i32) -> (i32, i32) {
    %c0_i32 = arith.constant 0 : i32
    %c0_i32_0 = arith.constant 0 : i32
    %c0_i32_1 = arith.constant 0 : i32
    return %c0_i32, %c0_i32_0 : i32, i32
  }
  func.func @transform_3(%arg0: i32) -> (i32, i32) {
    %c0_i32 = arith.constant 0 : i32
    %c0_i32_0 = arith.constant 0 : i32
    return %c0_i32, %arg0 : i32, i32
  }
}

</mosaic_0001>

<bundles_post_ra>
// kernel: tpu_custom_call.1
= control target key start
LH: loop header
LB: loop body
LE: loop exit
PB: predicated region body
PF: predicated region fallthrough
CT: control target
= control target key end

     0   :  { %8 = vsyncpa [#allocation3], 0  ;;  %s895_s0 = inlined_call_operand.vmem [shape: f32[32,81], index: 0, kind: input, shape index: {}]   ;;  %s896_s1 = inlined_call_operand.hbm [shape: f32[81,512], index: 1, kind: input, shape index: {}]   ;;  %s897_s2 = inlined_call_operand.vmem [shape: f32[32,1], index: 2, kind: input, shape index: {}]   ;;  %s898_s3 = inlined_call_operand.hbm [shape: f32[32,512], index: 3, kind: output, shape index: {}]  }
   0x1   :  { %10 = vsyncpa [#allocation3 + $0x1], 0 }
   0x2   :  { %11 = vsyncpa [#allocation4], 0 }
   0x3   :  { %13 = vsyncpa [#allocation4 + $0x1], 0  ;;  %s697_s12 = smov 0   ;;  %s699_s13 = smov 0  }
   0x4   :  { %s701_s14 = smov 0   ;;  %s703_s15 = smov 0  }
   0x5 LB: > { %s718_s16 = sadd.s32 4294967295, %s666_s15   ;;  %s423_s17 = sadd.s32 4294967294, %s666_s15   ;;  %s666_s15 = sphi %s703_s15, %s910_s15   ;;  %s662_s14 = sphi %s701_s14, %s909_s14   ;;  %s658_s13 = sphi %s699_s13, %s908_s13   ;;  %s654_s12 = sphi %s697_s12, %s907_s12  }
   0x6   : > { %s722_s18 = sadd.s32 1, %s666_s15   ;;  %s47_s19 = sadd.s32 1, %s662_s14 }
   0x7   : > { %s44_s20 = ssub.s32 %s666_s15, %s722_s18  ;;  %p54_p0 = scmp.ne.s32.totalorder %s662_s14, %s658_s13 }
   0x8   : > { %p45_p1 = scmp.eq.s32.totalorder %s44_s20, 0  ;;  %p55_p2 = scmp.eq.s32.totalorder %s666_s15, 0 }
   0x9   : > { %p60_p3 = scmp.ne.s32.totalorder %s658_s13, %s654_s12  ;;  %p61_p4 = scmp.eq.s32.totalorder %s718_s16, 0 }
   0xa   : > { %s734_s21 = scalar_select %p45_p1, %s662_s14, %s47_s19  }
   0xb   : > { %p56_p5 = por %p55_p2, %p54_p0  ;;  %p736_p6 = por %p61_p4, %p60_p3 }
   0xc   : > { %p105_p7 = scmp.eq.s32.totalorder %s718_s16, 3  ;;  %p111_p8 = scmp.eq.s32.totalorder %s423_s17, 3 }
   0xd   : > { %p527_p9 = scmp.lt.s32.totalorder %s666_s15, 4  ;;  %s137_s25 = sand.u32 1, %s662_s14  }
   0xe   : > { %p742_p10 = por %p105_p7, %p54_p0  ;;  %p746_p11 = por %p111_p8, %p60_p3 }
   0xf   : > { %s426_s26 = sshll.u32 %s666_s15, 7  ;;  %s513_s27 = smul.u32 88, %s137_s25 }
  0x10   : > { %s901_s23 = scalar_select %p742_p10, 1, 0 }
  0x11   : > { %s902_s24 = scalar_select %p746_p11, 1, 0 }
  0x12   : > { %s755_s30 = scalar_lea.hbm %s896_s1, %s426_s26  ;;  %p757_p12 = pnand %p527_p9, %p56_p5 }
  0x13   : > { %s141_s5 = scalar_lea.vmem [#allocation2], %s513_s27  ;;  %s764_s7 = scalar_lea.sflag [#allocation3], %s137_s25 }
  0x14   : > { %s147_s6 = sshll.u32 %s141_s5, 4  ;;  %s570_s8 = scalar_lea.hbm %s755_s30, 1408  ;;  %s761_s6 = int_to_ptr.vmem [resolvable:$true] %s147_s6 }
  0x15   : > { %p571_p0 = scmp.ne.s32.totalorder %s755_s30, %s570_s8  ;;  %p572_p1 = pneg %p757_p12 }
  0x16   : > { %s575_s11 = scalar_lea.hbm %s896_s1, 5632  ;;  %p576_p4 = scmp.lt.u32.totalorder %s755_s30, %s896_s1 }
  0x17   : > { %p573_p2 = pnand %p572_p1, %p571_p0  ;;  %p577_p5 = scmp.lt.u32.totalorder %s575_s11, %s570_s8 }
  0x18   : > { %p579_p8 = scmp.lt.u32.totalorder %s570_s8, %s755_s30 }
  0x19   : > { %p574_p3 = pneg %p573_p2  ;;  %p578_p7 = por %p577_p5, %p576_p4 }
  0x1b   : > { %p580_p9 = por %p579_p8, %p578_p7 }
  0x1d   : > { %p581_p13 = pnand %p580_p9, %p574_p3 }
  0x1f   : > { %584 = shalt.err (!%p581_p13)
}
  0x20   : > { %s585_s20 = scalar_lea.vmem %s761_s6, 1408  ;;  %s668_s25 = smov [#allocation2]  }
  0x21   : > { %p586_p0 = scmp.ne.s32.totalorder %s761_s6, %s585_s20  ;;  %s590_s26 = sshll.u32 %s668_s25, 4  ;;  %s591_s26 = int_to_ptr.vmem [resolvable:$false] %s590_s26 }
  0x22   : > { %s592_s27 = scalar_lea.vmem %s591_s26, 2816  ;;  %p593_p10 = scmp.lt.s32.totalorder %s761_s6, %s591_s26 }
  0x23   : > { %p588_p2 = pnand %p586_p0, %p572_p1  ;;  %p594_p4 = scmp.lt.s32.totalorder %s592_s27, %s585_s20 }
  0x25   : > { %p589_p11 = pneg %p588_p2  ;;  %p595_p5 = por %p594_p4, %p593_p10 }
  0x27   : > { %p596_p7 = pnand %p595_p5, %p589_p11 }
  0x29   : > { %599 = shalt.err (!%p596_p7)
}
  0x2a   : > { %s669_s28 = smov 512   ;;  %s670_s29 = smov 128  }
  0x2b   : > { %s671_s5 = smov 8   ;;  %p155_p13 = scmp.lt.s32.totalorder %s666_s15, 5 }
  0x2c   : > { %522 = dma.hbm_to_vmem [thread:$0]  (!%p757_p12), %s755_s30, 1408, %s761_s6, %s764_s7, %s669_s28, %s670_s29, %s671_s5  }
  0x2d   : > { %p904_p1 = scmp.ge.s32.totalorder %s666_s15, 1 }
  0x2f   : > { %p156_p3 = pnand %p904_p1, %p155_p13 }
  0x30   : > { %s796_s8 = sand.u32 (!%p156_p3), 1, %s658_s13  }
  0x31   : > { %159 = sbr.rel (%p156_p3) target bundleno = 315 (0x13b), region = 32  ;;  %s162_s10 = scalar_lea.sflag (!%p156_p3), [#allocation3], %s796_s8 }
  0x32   : > { %s514_s9 = smul.u32 (!%p156_p3), 88, %s796_s8 }
  0x34   : > { %s800_s11 = scalar_lea.vmem (!%p156_p3), [#allocation2], %s514_s9 }
  0x38   : > { %645 = dma.done.wait (%p736_p6), %s162_s10, 1408  }
  0x39   : > { %647 = vsyncadd (%p736_p6), %s162_s10, 4294965888  ;;  %v672_v0 = vmov 0   ;;  %v192_v1 = vld [vmem:[%s800_s11] sm:$0xff]  ;;  %v193_v2 = vld [vmem:[%s800_s11 + $0x8] sm:$0xff]  ;;  %vm227_vm0 = vcmask 662528   ;;  %vm240_vm1 = vcmask 1040384  }
  0x3a   : > { %569 = vset.pattern.permute.xlu1 %v672_v0  ;;  %568 = vset.pattern.permute.xlu0 %v672_v0  ;;  %v194_v3 = vld [vmem:[%s800_s11 + $0x10] sm:$0xff]  ;;  %v481_v4 = vpack.c.bf16 %v193_v2, %v192_v1  ;;  %v195_v5 = vld [vmem:[%s800_s11 + $0x18] sm:$0xff]  ;;  %v196_v7 = vld [vmem:[%s800_s11 + $0x20] sm:$0xff]  ;;  %s435_s4 = sshll.u32 %s718_s16, 7  ;;  %s338_s16 = scalar_lea.sflag [#allocation4], %s796_s8 }
  0x3b   : > { %v485_v6 = vpack.c.bf16 %v195_v5, %v194_v3  ;;  %v197_v8 = vld [vmem:[%s800_s11 + $0x28] sm:$0xff]  ;;  %v190_v10 = vld [vmem:[%s895_s0 + $0x10] sm:$0xff]  ;;  %v206_v16 = vld [vmem:[%s897_s2 + $0x18] sm:$0xff]  ;;  %s852_s17 = scalar_lea.hbm %s898_s3, %s435_s4  ;;  %p905_p10 = scmp.ne.s32.totalorder %s901_s23, 0 }
  0x3c   : > { %482 = vmatprep.subr.bf16.mxu0 %v481_v4  ;;  %501 = vmatprep.subr.bf16.mxu1 %v481_v4  ;;  %v188_v9 = vld [vmem:[%s895_s0] sm:$0xff]  ;;  %v489_v11 = vpack.c.bf16 %v197_v8, %v196_v7  ;;  %v205_v12 = vld [vmem:[%s897_s2 + $0x10] sm:$0xff]  ;;  %v204_v17 = vld [vmem:[%s897_s2 + $0x8] sm:$0xff]  ;;  %s673_s20 = smov [#allocation5]  }
  0x3d   : > { %484 = vmatpush3.bf16.msra.mxu0 %v481_v4  ;;  %507 = vmatpush3.bf16.msra.mxu1 %v481_v4  ;;  %v203_v13 = vld [vmem:[%s897_s2] sm:$0xff]  ;;  %v198_v14 = vld [vmem:[%s800_s11 + $0x30] sm:$0xff]  ;;  %v199_v15 = vld [vmem:[%s800_s11 + $0x38] sm:$0xff]  ;;  %s604_s25 = sshll.u32 %s673_s20, 4  ;;  %s605_s25 = int_to_ptr.vmem [resolvable:$false] %s604_s25 }
  0x3e   : > { %486 = vmatprep.subr.bf16.mxu0 %v485_v6  ;;  %502 = vmatprep.subr.bf16.mxu1 %v485_v6  ;;  %v493_v18 = vpack.c.bf16 %v199_v15, %v198_v14  ;;  %v200_v19 = vld [vmem:[%s800_s11 + $0x40] sm:$0xff]  ;;  %v201_v20 = vld [vmem:[%s800_s11 + $0x48] sm:$0xff]  ;;  %v202_v22 = vld [vmem:[%s800_s11 + $0x50] sm:$0x1]  ;;  %s428_s11 = sshll.u32 %s796_s8, 5  ;;  %s606_s26 = scalar_lea.vmem %s605_s25, 1024 }
  0x3f   : > { %475 = vmatprep.mubr.msk.f32.mxu0 %vm227_vm0, %v188_v9  ;;  %478 = vmatprep.mubr.msk.f32.mxu1 %vm227_vm0, %v190_v10  ;;  %v497_v21 = vpack.c.bf16 %v201_v20, %v200_v19  ;;  %v189_v23 = vld [vmem:[%s895_s0 + $0x8] sm:$0xff]  ;;  %v191_v24 = vld [vmem:[%s895_s0 + $0x18] sm:$0xff]  ;;  %s187_s22 = scalar_lea.vmem [#allocation5], %s428_s11 }
  0x40   : > { %219 = vperm.xlu1 %569, %v205_v12   ;;  %209 = vperm.xlu0 %568, %v203_v13   ;;  %s350_s30 = sshll.u32 %s187_s22, 4  ;;  %s847_s30 = int_to_ptr.vmem [resolvable:$true] %s350_s30 }
  0x41   : > { %488 = vmatpush3.bf16.msra.mxu0 %v485_v6  ;;  %508 = vmatpush3.bf16.msra.mxu1 %v485_v6  ;;  %s600_s19 = scalar_lea.vmem %s847_s30, 512  ;;  %p607_p8 = scmp.lt.s32.totalorder %s847_s30, %s605_s25 }
  0x42   : > { %490 = vmatprep.subr.bf16.mxu0 %v489_v11  ;;  %503 = vmatprep.subr.bf16.mxu1 %v489_v11  ;;  %p601_p6 = scmp.ne.s32.totalorder %s847_s30, %s600_s19  ;;  %p608_p9 = scmp.lt.s32.totalorder %s606_s26, %s600_s19 }
  0x44   : > { %224 = vperm.xlu1 %569, %v206_v16   ;;  %214 = vperm.xlu0 %568, %v204_v17   ;;  %p602_p11 = pnand %p601_p6, %p905_p10  ;;  %p609_p0 = por %p608_p9, %p607_p8 }
  0x45   : > { %492 = vmatpush3.bf16.msra.mxu0 %v489_v11  ;;  %509 = vmatpush3.bf16.msra.mxu1 %v489_v11 }
  0x46   : > { %494 = vmatprep.subr.bf16.mxu0 %v493_v18  ;;  %504 = vmatprep.subr.bf16.mxu1 %v493_v18  ;;  %p603_p12 = pneg %p602_p11 }
  0x48   : > { %p610_p2 = pnand %p609_p0, %p603_p12 }
  0x49   : > { %496 = vmatpush3.bf16.msra.mxu0 %v493_v18  ;;  %510 = vmatpush3.bf16.msra.mxu1 %v493_v18 }
  0x4a   : > { %498 = vmatprep.subr.bf16.mxu0 %v497_v21  ;;  %505 = vmatprep.subr.bf16.mxu1 %v497_v21 }
  0x4d   : > { %500 = vmatpush3.bf16.msra.mxu0 %v497_v21  ;;  %511 = vmatpush3.bf16.msra.mxu1 %v497_v21 }
  0x4e   : > { %473 = vmatprep.subr.msk.mxu0 %vm240_vm1, %v202_v22  ;;  %506 = vmatprep.subr.msk.mxu1 %vm240_vm1, %v202_v22 }
  0x51   : > { %474 = vmatpush3.msk.msra.mxu0 %vm240_vm1, %v202_v22  ;;  %512 = vmatpush3.msk.msra.mxu1 %vm240_vm1, %v202_v22 }
  0x52   : > { %476 = vmatmul.mubr.msk.f32.vlgmr.msra.gmra.mrb[0].mxu0 %vm227_vm0, %v189_v23  ;;  %479 = vmatmul.mubr.msk.f32.vlgmr.msra.gmra.mrb[0].mxu1 %vm227_vm0, %v191_v24 }
  0xbf   : > { %v220_v25 = vpop.permute.xlu1 %219  ;;  %v210_v26 = vpop.permute.xlu0 %209 }
  0xc3   : > { %v225_v27 = vpop.permute.xlu1 %224  ;;  %v215_v28 = vpop.permute.xlu0 %214 }
 0x125   : > { %v477_v29 = vpop.f32.mrb[0].mxu0  ;;  %v480_v30 = vpop.f32.mrb[0].mxu1 }
 0x126   : > { %v316_v31 = vadd.f32 %v477_v29, %v215_v28  ;;  %v326_v32 = vadd.f32 %v480_v30, %v225_v27  ;;  %v310_v33 = vpop.f32.mrb[1].mxu0  ;;  %v320_v34 = vpop.f32.mrb[1].mxu1 }
 0x127   : > { %v311_v35 = vadd.f32 %v310_v33, %v210_v26  ;;  %v321_v36 = vadd.f32 %v320_v34, %v220_v25 }
 0x128   : > { %v330_v37 = vmax.f32 %v316_v31, 0.0  ;;  %v332_v38 = vmax.f32 %v326_v32, 0.0 }
 0x129   : > { %v329_v39 = vmax.f32 %v311_v35, 0.0  ;;  %v331_v40 = vmax.f32 %v321_v36, 0.0 }
 0x12a   : > { %334 = vst [vmem:[%s187_s22 + $0x8] sm:$0xff] %v330_v37  ;;  %336 = vst [vmem:[%s187_s22 + $0x18] sm:$0xff] %v332_v38 }
 0x12b   : > { %333 = vst [vmem:[%s187_s22] sm:$0xff] %v329_v39  ;;  %335 = vst [vmem:[%s187_s22 + $0x10] sm:$0xff] %v331_v40 }
 0x12c   : > { %613 = shalt.err (!%p610_p2)
}
 0x12d   : > { %s614_s27 = scalar_lea.hbm %s852_s17, 512  ;;  %s618_s5 = scalar_lea.hbm %s898_s3, 2048 }
 0x12e   : > { %p615_p4 = scmp.ne.s32.totalorder %s852_s17, %s614_s27  ;;  %p619_p13 = scmp.lt.u32.totalorder %s852_s17, %s898_s3 }
 0x12f   : > { %p620_p1 = scmp.lt.u32.totalorder %s618_s5, %s614_s27  ;;  %p622_p6 = scmp.lt.u32.totalorder %s614_s27, %s852_s17 }
 0x130   : > { %p616_p5 = pnand %p615_p4, %p905_p10 }
 0x131   : > { %p621_p3 = por %p620_p1, %p619_p13 }
 0x132   : > { %p617_p7 = pneg %p616_p5 }
 0x133   : > { %p623_p11 = por %p622_p6, %p621_p3 }
 0x135   : > { %p624_p12 = pnand %p623_p11, %p617_p7 }
 0x137   : > { %627 = shalt.err (!%p624_p12)
}
 0x138   : > { %s674_s11 = smov 128   ;;  %s675_s22 = smov 512  }
 0x139   : > { %s676_s4 = smov 8  }
 0x13a   : > { %517 = dma.vmem_to_hbm [thread:$0]  (%p905_p10), %s847_s30, 512, %s852_s17, %s338_s16, %s674_s11, %s675_s22, %s676_s4  }
 0x13b PF: > { %p528_p8 = scmp.ge.s32.totalorder %s666_s15, 2  ;;  %s365_s6 = sand.u32 1, %s654_s12  }
 0x13c   : > { %p906_p9 = scmp.ne.s32.totalorder %s902_s24, 0  ;;  %s366_s7 = scalar_lea.sflag [#allocation4], %s365_s6 }
 0x13e   : > { %p524_p0 = pnand %p528_p8, %p906_p9 }
 0x140   : > { %649 = dma.done.wait (!%p524_p0), %s366_s7, 512  }
 0x141   : > { %651 = vsyncadd (!%p524_p0), %s366_s7, 4294966784  ;;  %p16_p2 = scmp.ge.s32.totalorder %s722_s18, 6   ;;  %s907_s12 = smov %s658_s13 }
 0x142   : > { %s908_s13 = smov %s662_s14  ;;  %s909_s14 = smov %s734_s21 }
 0x143   : > { %s910_s15 = smov %s722_s18  ;;  %18 = sbr.rel (!%p16_p2) target bundleno = 5 (0x5), region = 77 }
 0x14a   :  { %371 = vsyncpa [#allocation3], 1 }
 0x14b   :  { %373 = vsyncpa [#allocation3 + $0x1], 1 }
 0x14c   :  { %374 = vsyncpa [#allocation4], 1 }
 0x14d   :  { %376 = vsyncpa [#allocation4 + $0x1], 1 }

</bundles_post_ra>
